<compile_context>
chip_gen: v7x
topology: tpu7x:2x2x1
jax: 0.10.0
libtpu: 0.0.40
codegen_flags: <defaults>
</compile_context>

<pallas_src>
import functools

import jax
import jax.numpy as jnp
from jax import lax
from jax.experimental import pallas as pl
from jax.experimental.pallas import tpu as pltpu


LEAKY_SLOPE = 0.01   # torch.nn.LeakyReLU default


# ----------------------------------------------------------------------------
# small helpers
# ----------------------------------------------------------------------------
def _round_up(x, n):
    return ((x + n - 1) // n) * n


def _pick_row_block(m, target):
    """Largest multiple-of-8 divisor of m that is <= target (full m as fallback)."""
    if m % 8 != 0:
        return m
    tm = min(max(8, (target // 8) * 8), m)
    while m % tm != 0:
        tm -= 8
    return tm


def _apply_act(h, act):
    if act == "leaky_relu":
        return jnp.where(h >= 0, h, LEAKY_SLOPE * h)
    if act == "tanh":
        return jnp.tanh(h)
    return h


def _cross_sq_dists(a, b, a_sq_col, b_sq_row):
    """||a_i - b_j||^2 for a row block `a` against all rows `b` (transpose-free).

    The Gram goes to the MXU; the ||.||^2 terms are precomputed f32 vectors
    (diag(x @ x.T) is exactly the row sums, so no eye-mask extraction).
    """
    g = lax.dot_general(a, b, (((1,), (1,)), ((), ())),
                        preferred_element_type=jnp.float32)
    return jnp.maximum(a_sq_col + b_sq_row - 2.0 * g, 0.0)


# ----------------------------------------------------------------------------
# Kernel 1 & 3: fused MLP (encoder / decoder), optionally emitting cdist^2(X)
# ----------------------------------------------------------------------------
def _fused_mlp_kernel(*refs, acts, n_layers, with_cdist2):
    if with_cdist2:
        x_ref, xf_ref, xsqc_ref, xsqr_ref = refs[:4]
        wb = refs[4:4 + 2 * n_layers]
        out_ref = refs[4 + 2 * n_layers]
        d2_ref = refs[5 + 2 * n_layers]
    else:
        x_ref = refs[0]
        wb = refs[1:1 + 2 * n_layers]
        out_ref = refs[1 + 2 * n_layers]

    x = x_ref[...]                                     # (tm, Din) bf16

    if with_cdist2:
        d2_ref[...] = _cross_sq_dists(x, xf_ref[...], xsqc_ref[...], xsqr_ref[...])

    h = x
    for li in range(n_layers):
        w = wb[2 * li][...]                            # bf16 weights
        b = wb[2 * li + 1][...]                        # f32 (1, N) bias
        h = jnp.dot(h.astype(jnp.bfloat16), w,
                    preferred_element_type=jnp.float32) + b
        h = _apply_act(h, acts[li])
    out_ref[...] = h.astype(out_ref.dtype)


def fused_mlp(x, layers, acts, *, with_cdist2=False, row_block=256):
    """One pallas_call for a whole MLP stack, row-tiled over the batch.

    The last layer's weights/bias are zero-padded to a multiple of 128 output
    lanes so the final store is lane-dense; the result is sliced back here.
    Returns (out, d2x) when with_cdist2 else (out,).
    """
    x = x.astype(jnp.float32)
    M, Din = x.shape
    tm = _pick_row_block(M, row_block)
    grid = (M // tm,)

    n_layers = len(layers)
    n_out = layers[-1][0].shape[1]
    n_out_pad = _round_up(n_out, 128)

    x16 = x.astype(jnp.bfloat16)
    args = [x16]
    in_specs = [pl.BlockSpec((tm, Din), lambda i: (i, 0))]
    if with_cdist2:
        xsq = jnp.sum(x * x, axis=1, keepdims=True)            # (M, 1) f32
        args += [x16, xsq, xsq.reshape(1, M)]
        in_specs += [pl.BlockSpec((M, Din), lambda i: (0, 0)),
                     pl.BlockSpec((tm, 1), lambda i: (i, 0)),
                     pl.BlockSpec((1, M), lambda i: (0, 0))]

    flops, trans, bytes_acc = 0, 0, 2 * M * Din
    for li, (w, b) in enumerate(layers):
        w = w.astype(jnp.float32)
        b = b.reshape(1, -1).astype(jnp.float32)
        if li == n_layers - 1 and w.shape[1] != n_out_pad:
            w = jnp.pad(w, ((0, 0), (0, n_out_pad - n_out)))
            b = jnp.pad(b, ((0, 0), (0, n_out_pad - n_out)))
        w16 = w.astype(jnp.bfloat16)
        args += [w16, b]
        in_specs += [pl.BlockSpec(w16.shape, lambda i: (0, 0)),
                     pl.BlockSpec(b.shape, lambda i: (0, 0))]
        flops += 2 * M * w.shape[0] * w.shape[1]
        if acts[li] == "tanh":
            trans += M * w.shape[1]
        bytes_acc += 2 * w.shape[0] * w.shape[1] + 4 * w.shape[1]

    out_shapes = [jax.ShapeDtypeStruct((M, n_out_pad), jnp.float32)]
    out_specs = [pl.BlockSpec((tm, n_out_pad), lambda i: (i, 0))]
    bytes_acc += 4 * M * n_out_pad
    if with_cdist2:
        out_shapes.append(jax.ShapeDtypeStruct((M, M), jnp.float32))
        out_specs.append(pl.BlockSpec((tm, M), lambda i: (i, 0)))
        flops += 2 * M * M * Din + 4 * M * M
        bytes_acc += 4 * M * M + 2 * M * Din + 8 * M

    kernel = functools.partial(_fused_mlp_kernel, acts=tuple(acts),
                               n_layers=n_layers, with_cdist2=with_cdist2)
    outs = pl.pallas_call(
        kernel,
        grid=grid,
        in_specs=in_specs,
        out_specs=out_specs,
        out_shape=out_shapes,
        compiler_params=pltpu.CompilerParams(dimension_semantics=("parallel",)),
        cost_estimate=pl.CostEstimate(flops=int(flops), transcendentals=int(trans),
                                      bytes_accessed=int(bytes_acc)),
    )(*args)
    out = outs[0][:, :n_out]
    if with_cdist2:
        return out, outs[1]
    return (out,)


# ----------------------------------------------------------------------------
# Kernel 2: per-row sums of W ⊙ d2y (affinity + mask + cdist^2(Y) fused)
# ----------------------------------------------------------------------------
def _spectral_rowsum_kernel(xb_ref, xf_ref, xsqc_ref, xsqr_ref,
                            invs2_ref, thr_ref,
                            yb_ref, yf_ref, ysqc_ref, ysqr_ref, out_ref):
    # d2x for this row block, recomputed from bf16 X on the MXU (no M^2 HBM read).
    d2x = _cross_sq_dists(xb_ref[...], xf_ref[...], xsqc_ref[...], xsqr_ref[...])
    # Gaussian affinity with per-point (column) scale; kNN mask = single
    # threshold compare against the per-row k-th-NN squared distance.
    W = jnp.exp(-d2x * invs2_ref[...])
    W = W * (d2x <= thr_ref[...]).astype(jnp.float32)
    # No symmetrization needed: sum(0.5(W+W^T) ⊙ d2y) == sum(W ⊙ d2y), d2y symmetric.
    d2y = _cross_sq_dists(yb_ref[...], yf_ref[...], ysqc_ref[...], ysqr_ref[...])
    out_ref[...] = jnp.sum(W * d2y, axis=1, keepdims=True)


def fused_spectral_rowsums(x, xsq, inv_s2, thresh, y, ysq, *, row_block=256):
    M, Din = x.shape
    hdim = y.shape[1]
    tm = _pick_row_block(M, row_block)
    x16 = x.astype(jnp.bfloat16)
    y32 = y.astype(jnp.float32)           # tiny Gram kept f32 for loss fidelity
    ce = pl.CostEstimate(
        flops=int(2 * M * M * Din + 2 * M * M * hdim + 10 * M * M),
        transcendentals=int(M * M),
        bytes_accessed=int(2 * M * Din + 4 * M * hdim + 24 * M))
    return pl.pallas_call(
        _spectral_rowsum_kernel,
        grid=(M // tm,),
        in_specs=[pl.BlockSpec((tm, Din), lambda i: (i, 0)),
                  pl.BlockSpec((M, Din), lambda i: (0, 0)),
                  pl.BlockSpec((tm, 1), lambda i: (i, 0)),
                  pl.BlockSpec((1, M), lambda i: (0, 0)),
                  pl.BlockSpec((1, M), lambda i: (0, 0)),
                  pl.BlockSpec((tm, 1), lambda i: (i, 0)),
                  pl.BlockSpec((tm, hdim), lambda i: (i, 0)),
                  pl.BlockSpec((M, hdim), lambda i: (0, 0)),
                  pl.BlockSpec((tm, 1), lambda i: (i, 0)),
                  pl.BlockSpec((1, M), lambda i: (0, 0))],
        out_specs=pl.BlockSpec((tm, 1), lambda i: (i, 0)),
        out_shape=jax.ShapeDtypeStruct((M, 1), jnp.float32),
        compiler_params=pltpu.CompilerParams(dimension_semantics=("parallel",)),
        cost_estimate=ce,
    )(x16, x16, xsq, xsq.reshape(1, M),
      inv_s2.reshape(1, M), thresh.reshape(M, 1),
      y32, y32, ysq, ysq.reshape(1, M))


# ----------------------------------------------------------------------------
# Kernel 2b (is_normalized=True only): per-row degree of the symmetrized W,
# transpose-free (column sums re-expressed as row sums via d2x symmetry).
# ----------------------------------------------------------------------------
def _sym_degree_kernel(xb_ref, xf_ref, xsqc_ref, xsqr_ref,
                       invs2_row_ref, invs2_col_ref, thr_col_ref, thr_row_ref,
                       out_ref):
    d2x = _cross_sq_dists(xb_ref[...], xf_ref[...], xsqc_ref[...], xsqr_ref[...])
    w_row = jnp.exp(-d2x * invs2_row_ref[...]) * \
        (d2x <= thr_col_ref[...]).astype(jnp.float32)        # W[i, :]
    w_col = jnp.exp(-d2x * invs2_col_ref[...]) * \
        (d2x <= thr_row_ref[...]).astype(jnp.float32)        # W[:, i] laid out as rows
    out_ref[...] = 0.5 * (jnp.sum(w_row, axis=1, keepdims=True) +
                          jnp.sum(w_col, axis=1, keepdims=True))


def fused_sym_degree(x, xsq, inv_s2, thresh, *, row_block=256):
    M, Din = x.shape
    tm = _pick_row_block(M, row_block)
    x16 = x.astype(jnp.bfloat16)
    return pl.pallas_call(
        _sym_degree_kernel,
        grid=(M // tm,),
        in_specs=[pl.BlockSpec((tm, Din), lambda i: (i, 0)),
                  pl.BlockSpec((M, Din), lambda i: (0, 0)),
                  pl.BlockSpec((tm, 1), lambda i: (i, 0)),
                  pl.BlockSpec((1, M), lambda i: (0, 0)),
                  pl.BlockSpec((1, M), lambda i: (0, 0)),
                  pl.BlockSpec((tm, 1), lambda i: (i, 0)),
                  pl.BlockSpec((tm, 1), lambda i: (i, 0)),
                  pl.BlockSpec((1, M), lambda i: (0, 0))],
        out_specs=pl.BlockSpec((tm, 1), lambda i: (i, 0)),
        out_shape=jax.ShapeDtypeStruct((M, 1), jnp.float32),
        compiler_params=pltpu.CompilerParams(dimension_semantics=("parallel",)),
    )(x16, x16, xsq, xsq.reshape(1, M),
      inv_s2.reshape(1, M), inv_s2.reshape(M, 1),
      thresh.reshape(M, 1), thresh.reshape(1, M))


# ----------------------------------------------------------------------------
# Parameter construction (deterministic, mimics torch.nn.Linear default init)
# ----------------------------------------------------------------------------
def init_params(key, input_dim, hiddens):
    keys = jax.random.split(key, 4 * (2 * len(hiddens) + 2))
    ki = [0]

    def make_linear(fan_in, fan_out):
        bound = 1.0 / (fan_in ** 0.5)
        w = jax.random.uniform(keys[ki[0]], (fan_in, fan_out), jnp.float32,
                               -bound, bound)
        b = jax.random.uniform(keys[ki[0] + 1], (fan_out,), jnp.float32,
                               -bound, bound)
        ki[0] += 2
        return w, b

    enc, dec = [], []
    # encoder: Linear+LeakyReLU ... Linear+Tanh (last)
    cur = input_dim
    for i, h in enumerate(hiddens):
        act = "tanh" if i == len(hiddens) - 1 else "leaky_relu"
        w, b = make_linear(cur, h)
        enc.append((w, b, act))
        if i != len(hiddens) - 1:
            cur = h
    # decoder: Linear+Tanh (first), Linear+LeakyReLU..., final Linear (no act)
    cur = hiddens[-1]
    for i, h in enumerate(reversed(hiddens[:-1])):
        act = "tanh" if i == 0 else "leaky_relu"
        w, b = make_linear(cur, h)
        dec.append((w, b, act))
        cur = h
    w, b = make_linear(cur, input_dim)
    dec.append((w, b, "none"))
    return enc, dec


# ----------------------------------------------------------------------------
# Forward pass (encode -> spectral loss (stored) -> decode), matching the
# torch module's forward semantics.
# ----------------------------------------------------------------------------
def forward(enc_params, dec_params, X_in, *, num_neighbours, scale_k,
            is_local, is_normalized=False, row_block=256):
    X = X_in.astype(jnp.float32)
    m = X.shape[0]

    # -------- encode (fused, row-tiled) + pairwise sq-dists of X ------------
    enc_layers = [(w, b) for (w, b, _) in enc_params]
    enc_acts = [a for (_, _, a) in enc_params]
    Y_tilde, d2x = fused_mlp(X, enc_layers, enc_acts,
                             with_cdist2=True, row_block=row_block)

    # orthonormalization weights: sqrt(m) * inv(R) with QR(Y_tilde)
    # TODO(synk): QR decomposition / matrix inverse have no Pallas equivalent;
    #             kept as plain-JAX (XLA) glue.
    _, R = jnp.linalg.qr(Y_tilde)
    orth_w = jnp.sqrt(jnp.float32(m)) * jnp.linalg.inv(R)
    Y = Y_tilde @ orth_w                                   # tiny (m, h) matmul

    # -------- kNN stats from d2x (XLA top_k glue) ---------------------------
    # TODO(synk): top_k / median selection kept in XLA; only their (M,k)/(M,)
    #             outputs feed the Pallas loss kernel.
    k = num_neighbours + 1
    neg_d2, _ = lax.top_k(-d2x, k)
    d2_knn = -neg_d2                                       # (M, k) smallest sq-dists
    thresh = d2_knn[:, k - 1]                              # (M,) k-th NN sq-dist == mask threshold
    if is_local:
        scale_sq = jnp.maximum(thresh, 1e-14)              # scale^2 directly (no sqrt round trip)
    else:
        d_scale_k = jnp.sqrt(jnp.maximum(d2_knn[:, scale_k - 1], 0.0))
        s = jnp.maximum(jnp.median(d_scale_k), 1e-7)
        scale_sq = jnp.full((m,), s * s)
    inv_s2 = 1.0 / scale_sq

    xsq = jnp.sum(X * X, axis=1, keepdims=True)            # (M, 1) f32

    # -------- spectral loss (stored attribute in the torch module) ----------
    if is_normalized:
        deg = fused_sym_degree(X, xsq, inv_s2, thresh, row_block=row_block)
        Y_loss = Y * lax.rsqrt(jnp.maximum(deg, 1e-12))
    else:
        Y_loss = Y
    ysq = jnp.sum(Y_loss * Y_loss, axis=1, keepdims=True)
    row_sums = fused_spectral_rowsums(X, xsq, inv_s2, thresh, Y_loss, ysq,
                                      row_block=row_block)
    spectral_loss = jnp.sum(row_sums) / jnp.float32(2 * m)

    # -------- decode (fused, row-tiled) --------------------------------------
    # decode(Y) starts with Y @ inv(orth_w) == Y_tilde; the degree-normalized Y
    # only ever exists inside the loss (as in torch), so feeding Y_tilde is exact.
    dec_layers = [(w, b) for (w, b, _) in dec_params]
    dec_acts = [a for (_, _, a) in dec_params]
    X_out = fused_mlp(Y_tilde, dec_layers, dec_acts,
                      with_cdist2=False, row_block=row_block)[0]
    return X_out, spectral_loss


# ----------------------------------------------------------------------------
if __name__ == "__main__":
    key = jax.random.PRNGKey(0)

    # architecture['hiddens']; last entry = spectral embedding dim (num classes)
    input_dim = 32
    hiddens = [64, 32, 8]
    batch = 16
    affinity_config = {"scale_k": 2, "num_neighbours": 5,
                       "is_local_scale": True, "device": None}

    pkey, xkey = jax.random.split(key)
    enc_params, dec_params = init_params(pkey, input_dim, hiddens)
    X_in = jax.random.normal(xkey, (batch, input_dim), jnp.float32)

    # row_block=8 -> a 2-step "parallel" row grid at batch=16 so the tiled path
    # (and both TensorCores on v7x) is actually exercised.
    X_out, loss = forward(
        enc_params, dec_params, X_in,
        num_neighbours=affinity_config["num_neighbours"],
        scale_k=affinity_config["scale_k"],
        is_local=affinity_config["is_local_scale"],
        is_normalized=False,
        row_block=8,
    )
    jax.block_until_ready((X_out, loss))

    assert X_out.shape == (batch, input_dim)
    assert X_out.dtype == jnp.float32
    assert bool(jnp.isfinite(loss))

    # also exercise the normalized-Laplacian path (degree kernel)
    X_out_n, loss_n = forward(
        enc_params, dec_params, X_in,
        num_neighbours=affinity_config["num_neighbours"],
        scale_k=affinity_config["scale_k"],
        is_local=affinity_config["is_local_scale"],
        is_normalized=True,
        row_block=8,
    )
    jax.block_until_ready((X_out_n, loss_n))
    assert bool(jnp.isfinite(loss_n))

    print("KERNEL_OK")
</pallas_src>

<mosaic_0001>
module attributes {stable_mosaic.version = 11 : i64} {
  func.func @_fused_mlp_kernel(%arg0: i32, %arg1: memref<8x32xbf16, #tpu.memory_space<vmem>>, %arg2: memref<16x32xbf16, #tpu.memory_space<vmem>>, %arg3: memref<8x1xf32, #tpu.memory_space<vmem>>, %arg4: memref<1x16xf32, #tpu.memory_space<vmem>>, %arg5: memref<32x64xbf16, #tpu.memory_space<vmem>>, %arg6: memref<1x64xf32, #tpu.memory_space<vmem>>, %arg7: memref<64x32xbf16, #tpu.memory_space<vmem>>, %arg8: memref<1x32xf32, #tpu.memory_space<vmem>>, %arg9: memref<32x128xbf16, #tpu.memory_space<vmem>>, %arg10: memref<1x128xf32, #tpu.memory_space<vmem>>, %arg11: memref<8x128xf32, #tpu.memory_space<vmem>>, %arg12: memref<8x16xf32, #tpu.memory_space<vmem>>) attributes {dimension_semantics = [#tpu.dimension_semantics<parallel>], iteration_bounds = array<i64: 2>, scalar_prefetch = 0 : i64, scratch_operands = 0 : i64, tpu.core_type = #tpu.core_type<tc>, window_params = [{transform_indices = @transform_0, window_bounds = array<i64: 8, 32>}, {pipeline_mode = #tpu.pipeline_mode<synchronous>, transform_indices = @transform_1, window_bounds = array<i64: 16, 32>}, {transform_indices = @transform_2, window_bounds = array<i64: 8, 1>}, {pipeline_mode = #tpu.pipeline_mode<synchronous>, transform_indices = @transform_3, window_bounds = array<i64: 1, 16>}, {pipeline_mode = #tpu.pipeline_mode<synchronous>, transform_indices = @transform_4, window_bounds = array<i64: 32, 64>}, {pipeline_mode = #tpu.pipeline_mode<synchronous>, transform_indices = @transform_5, window_bounds = array<i64: 1, 64>}, {pipeline_mode = #tpu.pipeline_mode<synchronous>, transform_indices = @transform_6, window_bounds = array<i64: 64, 32>}, {pipeline_mode = #tpu.pipeline_mode<synchronous>, transform_indices = @transform_7, window_bounds = array<i64: 1, 32>}, {pipeline_mode = #tpu.pipeline_mode<synchronous>, transform_indices = @transform_8, window_bounds = array<i64: 32, 128>}, {pipeline_mode = #tpu.pipeline_mode<synchronous>, transform_indices = @transform_9, window_bounds = array<i64: 1, 128>}, {transform_indices = @transform_10, window_bounds = array<i64: 8, 128>}, {transform_indices = @transform_11, window_bounds = array<i64: 8, 16>}]} {
    %c0 = arith.constant 0 : index
    %c0_0 = arith.constant 0 : index
    %0 = vector.load %arg1[%c0, %c0_0] : memref<8x32xbf16, #tpu.memory_space<vmem>>, vector<8x32xbf16>
    %c0_1 = arith.constant 0 : index
    %c0_2 = arith.constant 0 : index
    %1 = vector.load %arg2[%c0_1, %c0_2] : memref<16x32xbf16, #tpu.memory_space<vmem>>, vector<16x32xbf16>
    %c0_3 = arith.constant 0 : index
    %c0_4 = arith.constant 0 : index
    %2 = vector.load %arg3[%c0_3, %c0_4] : memref<8x1xf32, #tpu.memory_space<vmem>>, vector<8x1xf32>
    %c0_5 = arith.constant 0 : index
    %c0_6 = arith.constant 0 : index
    %3 = vector.load %arg4[%c0_5, %c0_6] : memref<1x16xf32, #tpu.memory_space<vmem>>, vector<1x16xf32>
    %cst = arith.constant dense<0.000000e+00> : vector<8x16xf32>
    %4 = tpu.matmul %0, %1, %cst {dimension_numbers = #tpu.dot_dimension_numbers<[1], [1], [0], [0], [0, 0, 1, 0], [], []>} : vector<8x32xbf16>, vector<16x32xbf16>, vector<8x16xf32> -> vector<8x16xf32>
    %5 = vector.broadcast %2 : vector<8x1xf32> to vector<8x16xf32>
    %6 = vector.broadcast %3 : vector<1x16xf32> to vector<8x16xf32>
    %7 = arith.addf %5, %6 : vector<8x16xf32>
    %cst_7 = arith.constant 2.000000e+00 : f32
    %8 = vector.broadcast %cst_7 : f32 to vector<8x16xf32>
    %9 = arith.mulf %8, %4 : vector<8x16xf32>
    %10 = arith.subf %7, %9 : vector<8x16xf32>
    %cst_8 = arith.constant 0.000000e+00 : f32
    %11 = vector.broadcast %cst_8 : f32 to vector<8x16xf32>
    %12 = arith.maximumf %10, %11 : vector<8x16xf32>
    %c0_9 = arith.constant 0 : index
    %c0_10 = arith.constant 0 : index
    %13 = vector.load %arg12[%c0_9, %c0_10] : memref<8x16xf32, #tpu.memory_space<vmem>>, vector<8x16xf32>
    tpu.vector_store %arg12[%c0_9, %c0_10], %12 {strides = array<i32>} : memref<8x16xf32, #tpu.memory_space<vmem>>, vector<8x16xf32>,
    %c0_11 = arith.constant 0 : index
    %c0_12 = arith.constant 0 : index
    %14 = vector.load %arg5[%c0_11, %c0_12] : memref<32x64xbf16, #tpu.memory_space<vmem>>, vector<32x64xbf16>
    %c0_13 = arith.constant 0 : index
    %c0_14 = arith.constant 0 : index
    %15 = vector.load %arg6[%c0_13, %c0_14] : memref<1x64xf32, #tpu.memory_space<vmem>>, vector<1x64xf32>
    %cst_15 = arith.constant dense<0.000000e+00> : vector<8x64xf32>
    %16 = tpu.matmul %0, %14, %cst_15 {dimension_numbers = #tpu.dot_dimension_numbers<[1], [0], [0], [1], [0, 0, 1, 1], [], []>} : vector<8x32xbf16>, vector<32x64xbf16>, vector<8x64xf32> -> vector<8x64xf32>
    %17 = vector.broadcast %15 : vector<1x64xf32> to vector<8x64xf32>
    %18 = arith.addf %16, %17 : vector<8x64xf32>
    %cst_16 = arith.constant 0.000000e+00 : f32
    %19 = vector.broadcast %cst_16 : f32 to vector<8x64xf32>
    %20 = arith.cmpf oge, %18, %19 : vector<8x64xf32>
    %cst_17 = arith.constant 0.00999999977 : f32
    %21 = vector.broadcast %cst_17 : f32 to vector<8x64xf32>
    %22 = arith.mulf %21, %18 : vector<8x64xf32>
    %23 = arith.select %20, %18, %22 : vector<8x64xi1>, vector<8x64xf32>
    %c0_18 = arith.constant 0 : index
    %c0_19 = arith.constant 0 : index
    %24 = vector.load %arg7[%c0_18, %c0_19] : memref<64x32xbf16, #tpu.memory_space<vmem>>, vector<64x32xbf16>
    %c0_20 = arith.constant 0 : index
    %c0_21 = arith.constant 0 : index
    %25 = vector.load %arg8[%c0_20, %c0_21] : memref<1x32xf32, #tpu.memory_space<vmem>>, vector<1x32xf32>
    %26 = arith.truncf %23 : vector<8x64xf32> to vector<8x64xbf16>
    %cst_22 = arith.constant dense<0.000000e+00> : vector<8x32xf32>
    %27 = tpu.matmul %26, %24, %cst_22 {dimension_numbers = #tpu.dot_dimension_numbers<[1], [0], [0], [1], [0, 0, 1, 1], [], []>} : vector<8x64xbf16>, vector<64x32xbf16>, vector<8x32xf32> -> vector<8x32xf32>
    %28 = vector.broadcast %25 : vector<1x32xf32> to vector<8x32xf32>
    %29 = arith.addf %27, %28 : vector<8x32xf32>
    %cst_23 = arith.constant 0.000000e+00 : f32
    %30 = vector.broadcast %cst_23 : f32 to vector<8x32xf32>
    %31 = arith.cmpf oge, %29, %30 : vector<8x32xf32>
    %cst_24 = arith.constant 0.00999999977 : f32
    %32 = vector.broadcast %cst_24 : f32 to vector<8x32xf32>
    %33 = arith.mulf %32, %29 : vector<8x32xf32>
    %34 = arith.select %31, %29, %33 : vector<8x32xi1>, vector<8x32xf32>
    %c0_25 = arith.constant 0 : index
    %c0_26 = arith.constant 0 : index
    %35 = vector.load %arg9[%c0_25, %c0_26] : memref<32x128xbf16, #tpu.memory_space<vmem>>, vector<32x128xbf16>
    %c0_27 = arith.constant 0 : index
    %c0_28 = arith.constant 0 : index
    %36 = vector.load %arg10[%c0_27, %c0_28] : memref<1x128xf32, #tpu.memory_space<vmem>>, vector<1x128xf32>
    %37 = arith.truncf %34 : vector<8x32xf32> to vector<8x32xbf16>
    %cst_29 = arith.constant dense<0.000000e+00> : vector<8x128xf32>
    %38 = tpu.matmul %37, %35, %cst_29 {dimension_numbers = #tpu.dot_dimension_numbers<[1], [0], [0], [1], [0, 0, 1, 1], [], []>} : vector<8x32xbf16>, vector<32x128xbf16>, vector<8x128xf32> -> vector<8x128xf32>
    %39 = vector.broadcast %36 : vector<1x128xf32> to vector<8x128xf32>
    %40 = arith.addf %38, %39 : vector<8x128xf32>
    %41 = math.tanh %40 : vector<8x128xf32>
    %c0_30 = arith.constant 0 : index
    %c0_31 = arith.constant 0 : index
    %42 = vector.load %arg11[%c0_30, %c0_31] : memref<8x128xf32, #tpu.memory_space<vmem>>, vector<8x128xf32>
    tpu.vector_store %arg11[%c0_30, %c0_31], %41 {strides = array<i32>} : memref<8x128xf32, #tpu.memory_space<vmem>>, vector<8x128xf32>,
    return
  }
  func.func @transform_0(%arg0: i32) -> (i32, i32) {
    %c0_i32 = arith.constant 0 : i32
    %c0_i32_0 = arith.constant 0 : i32
    return %arg0, %c0_i32 : i32, i32
  }
  func.func @transform_1(%arg0: i32) -> (i32, i32) {
    %c0_i32 = arith.constant 0 : i32
    %c0_i32_0 = arith.constant 0 : i32
    %c0_i32_1 = arith.constant 0 : i32
    return %c0_i32, %c0_i32_0 : i32, i32
  }
  func.func @transform_2(%arg0: i32) -> (i32, i32) {
    %c0_i32 = arith.constant 0 : i32
    %c0_i32_0 = arith.constant 0 : i32
    return %arg0, %c0_i32 : i32, i32
  }
  func.func @transform_3(%arg0: i32) -> (i32, i32) {
    %c0_i32 = arith.constant 0 : i32
    %c0_i32_0 = arith.constant 0 : i32
    %c0_i32_1 = arith.constant 0 : i32
    return %c0_i32, %c0_i32_0 : i32, i32
  }
  func.func @transform_4(%arg0: i32) -> (i32, i32) {
    %c0_i32 = arith.constant 0 : i32
    %c0_i32_0 = arith.constant 0 : i32
    %c0_i32_1 = arith.constant 0 : i32
    return %c0_i32, %c0_i32_0 : i32, i32
  }
  func.func @transform_5(%arg0: i32) -> (i32, i32) {
    %c0_i32 = arith.constant 0 : i32
    %c0_i32_0 = arith.constant 0 : i32
    %c0_i32_1 = arith.constant 0 : i32
    return %c0_i32, %c0_i32_0 : i32, i32
  }
  func.func @transform_6(%arg0: i32) -> (i32, i32) {
    %c0_i32 = arith.constant 0 : i32
    %c0_i32_0 = arith.constant 0 : i32
    %c0_i32_1 = arith.constant 0 : i32
    return %c0_i32, %c0_i32_0 : i32, i32
  }
  func.func @transform_7(%arg0: i32) -> (i32, i32) {
    %c0_i32 = arith.constant 0 : i32
    %c0_i32_0 = arith.constant 0 : i32
    %c0_i32_1 = arith.constant 0 : i32
    return %c0_i32, %c0_i32_0 : i32, i32
  }
  func.func @transform_8(%arg0: i32) -> (i32, i32) {
    %c0_i32 = arith.constant 0 : i32
    %c0_i32_0 = arith.constant 0 : i32
    %c0_i32_1 = arith.constant 0 : i32
    return %c0_i32, %c0_i32_0 : i32, i32
  }
  func.func @transform_9(%arg0: i32) -> (i32, i32) {
    %c0_i32 = arith.constant 0 : i32
    %c0_i32_0 = arith.constant 0 : i32
    %c0_i32_1 = arith.constant 0 : i32
    return %c0_i32, %c0_i32_0 : i32, i32
  }
  func.func @transform_10(%arg0: i32) -> (i32, i32) {
    %c0_i32 = arith.constant 0 : i32
    %c0_i32_0 = arith.constant 0 : i32
    return %arg0, %c0_i32 : i32, i32
  }
  func.func @transform_11(%arg0: i32) -> (i32, i32) {
    %c0_i32 = arith.constant 0 : i32
    %c0_i32_0 = arith.constant 0 : i32
    return %arg0, %c0_i32 : i32, i32
  }
}

</mosaic_0001>

<bundles_post_ra>
// kernel: tpu_custom_call.1
= control target key start
LH: loop header
LB: loop body
LE: loop exit
PB: predicated region body
PF: predicated region fallthrough
CT: control target
= control target key end

     0   :  { %s1342_s0 = inlined_call_operand.vmem [shape: bf16[16,32], index: 0, kind: input, shape index: {}]   ;;  %s1343_s1 = inlined_call_operand.vmem [shape: bf16[16,32], index: 1, kind: input, shape index: {}]   ;;  %s1344_s2 = inlined_call_operand.vmem [shape: f32[16,1], index: 2, kind: input, shape index: {}]   ;;  %s1345_s3 = inlined_call_operand.vmem [shape: f32[1,16], index: 3, kind: input, shape index: {}]   ;;  %s1346_s4 = inlined_call_operand.vmem [shape: bf16[32,64], index: 4, kind: input, shape index: {}]   ;;  %s1347_s5 = inlined_call_operand.vmem [shape: f32[1,64], index: 5, kind: input, shape index: {}]   ;;  %s1348_s6 = inlined_call_operand.vmem [shape: bf16[64,32], index: 6, kind: input, shape index: {}]   ;;  %s1349_s7 = inlined_call_operand.vmem [shape: f32[1,32], index: 7, kind: input, shape index: {}]   ;;  %s1350_s8 = inlined_call_operand.vmem [shape: bf16[32,128], index: 8, kind: input, shape index: {}]   ;;  %s1351_s9 = inlined_call_operand.vmem [shape: f32[1,128], index: 9, kind: input, shape index: {}]   ;;  %s1352_s10 = inlined_call_operand.hbm [shape: f32[16,128], index: 10, kind: output, shape index: {0}]   ;;  %s1353_s11 = inlined_call_operand.hbm [shape: f32[16,16], index: 11, kind: output, shape index: {1}]  }
   0x1   :  { %1356 = sst [smem:[#allocation8_spill]] %s1342_s0 }
   0x2   :  { %1357 = sst [smem:[#allocation9_spill]] %s1343_s1 }
   0x3   :  { %1358 = sst [smem:[#allocation10_spill]] %s1344_s2 }
   0x4   :  { %17 = vsyncpa [#allocation3], 0 }
   0x5   :  { %19 = vsyncpa [#allocation3 + $0x1], 0 }
   0x6   :  { %20 = vsyncpa [#allocation5], 0 }
   0x7   :  { %22 = vsyncpa [#allocation5 + $0x1], 0  ;;  %s1140_s17 = smov 0   ;;  %s1142_s18 = smov 0  }
   0x8   :  { %s1144_s19 = smov 0   ;;  %s1146_s20 = smov 0  }
   0x9 LB: > { %s1161_s21 = sadd.s32 4294967295, %s1073_s20   ;;  %s842_s22 = sadd.s32 4294967294, %s1073_s20   ;;  %s1073_s20 = sphi %s1146_s20, %s1369_s20   ;;  %s1069_s19 = sphi %s1144_s19, %s1368_s19   ;;  %s1065_s18 = sphi %s1142_s18, %s1367_s18   ;;  %s1061_s17 = sphi %s1140_s17, %s1366_s17  }
   0xa   : > { %s1165_s23 = sadd.s32 1, %s1073_s20   ;;  %s255_s24 = sadd.s32 1, %s1069_s19 }
   0xb   : > { %s252_s25 = ssub.s32 %s1073_s20, %s1165_s23  ;;  %p265_p0 = scmp.ne.s32.totalorder %s1069_s19, %s1065_s18 }
   0xc   : > { %p253_p1 = scmp.eq.s32.totalorder %s252_s25, 0  ;;  %p266_p2 = scmp.eq.s32.totalorder %s1161_s21, 1 }
   0xd   : > { %p271_p3 = scmp.ne.s32.totalorder %s1065_s18, %s1061_s17  ;;  %p272_p4 = scmp.eq.s32.totalorder %s842_s22, 1 }
   0xe   : > { %s1176_s26 = scalar_select %p253_p1, %s1069_s19, %s255_s24  }
   0xf   : > { %p1178_p5 = por %p266_p2, %p265_p0  ;;  %p1182_p6 = por %p272_p4, %p271_p3 }
  0x10   : > { %p845_p7 = scmp.ge.s32.totalorder %s1073_s20, 1  ;;  %p354_p8 = scmp.lt.s32.totalorder %s1073_s20, 3 }
  0x12   : > { %p355_p9 = pnand %p845_p7, %p354_p8 }
  0x13   : > { %v968_v0 = vld [vmem:[%s1346_s4] sm:$0xff] (!%p355_p9)   ;;  %v1075_v1 = vmov (!%p355_p9), 0.0   ;;  %v969_v2 = vld [vmem:[%s1346_s4 + $0x8] sm:$0xff] (!%p355_p9)   ;;  %vm1076_vm0 = vmmov (!%p355_p9), 0   ;;  %p402_p10 = scmp.lt.s32.totalorder (!%p355_p9), %s1161_s21, 1  ;;  %s1361_s1 = sld [smem:[#allocation9_spill]] (!%p355_p9) }
  0x14   : > { %358 = sbr.rel (%p355_p9) target bundleno = 709 (0x2c5), region = 60  ;;  %892 = vmatprep.subr.bf16.mxu1 (!%p355_p9), %v1075_v1  ;;  %886 = vmatprep.subr.bf16.mxu0 (!%p355_p9), %v1075_v1  ;;  %vm421_vm1 = vcmask (!%p355_p9), 261120   ;;  %s1362_s0 = sld [smem:[#allocation8_spill]] (!%p355_p9)  ;;  %v971_v6 = vld [vmem:[%s1348_s6] sm:$0xff] (!%p355_p9)   ;;  %v972_v7 = vld [vmem:[%s1348_s6 + $0x8] sm:$0xff] (!%p355_p9)   ;;  %v973_v8 = vld [vmem:[%s1348_s6 + $0x10] sm:$0xff] (!%p355_p9)  }
  0x15   : > { %893 = vmatpush3.bf16.msra.mxu1 (!%p355_p9), %v968_v0  ;;  %896 = vmatprep.mubr.msk.bf16.mxu1 (!%p355_p9), %vm1076_vm0, %v1075_v1  ;;  %v974_v9 = vld [vmem:[%s1348_s6 + $0x18] sm:$0xff] (!%p355_p9)   ;;  %v1077_v10 = vmov (!%p355_p9), 0   ;;  %s1363_s2 = sld [smem:[#allocation10_spill]] (!%p355_p9)  ;;  %v853_v12 = vld [vmem:[%s1347_s5] ss:$0 sm:$0xff] (!%p355_p9)  ;;  %vm591_vm3 = vcmask (!%p355_p9), 523264  }
  0x16   : > { %894 = vmatprep.subr.bf16.mxu1 (!%p355_p9), %v1075_v1  ;;  %888 = vmatprep.mubr.msk.bf16.mxu0 (!%p355_p9), %vm1076_vm0, %v1075_v1  ;;  %v852_v25 = vld [vmem:[%s1345_s3] ss:$0 sm:$0xff] (!%p355_p9)  ;;  %s1247_s24 = sand.u32 (!%p355_p9), 1, %s1065_s18   ;;  %vm483_vm4 = vcmask (!%p355_p9), 130048   ;;  %v976_v32 = vld [vmem:[%s1350_s8 + $0x8] sm:$0xff] (!%p355_p9)  }
  0x17   : > { %967 = vset.pattern.permute.xlu0 (!%p355_p9), %v1077_v10  ;;  %s1354_s25 = sshll.u32 (!%p355_p9), %s1247_s24, 3  ;;  %v975_v31 = vld [vmem:[%s1350_s8] sm:$0xff] (!%p355_p9)   ;;  %s713_s15 = scalar_lea.sflag (!%p355_p9), [#allocation5], %s1247_s24 }
  0x18   : > { %v857_v33 = vld [vmem:[%s1349_s7] ss:$0 sm:$0xff] (!%p355_p9) }
  0x19   : > { %v970_v3 = vld [vmem:[%s1361_s1] sm:$0xff] (!%p355_p9)   ;;  %895 = vmatpush3.bf16.msra.mxu1 (!%p355_p9), %v969_v2 }
  0x1a   : > { %v426_v4 = vsel (!%p355_p9), %vm421_vm1, %v970_v3, 0  ;;  %912 = vmatprep.subr.bf16.mxu1 (!%p355_p9), %v1075_v1 }
  0x1b   : > { %s1206_s16 = scalar_select %p402_p10, %s1161_s21, 1  ;;  %887 = vmatpush3.bf16.xpose.msra.mxu0 %v426_v4 }
  0x1c   : > { %900 = vmatprep.subr.bf16.mxu0 %v1075_v1 }
  0x1d   : > { %s848_s22 = sshll.u32 %s1206_s16, 2 }
  0x1e   : > { %s405_s29 = scalar_lea.vmem %s1362_s0, %s848_s22  ;;  %s1355_s22 = sshll.u32 %s1161_s21, 7 }
  0x1f   : > { %v411_v5 = vld [vmem:[%s405_s29] sm:$0xf]  ;;  %s849_s29 = sshll.u32 %s1206_s16, 3 }
  0x20   : > { %897 = vmatmul.mubr.msk.bf16.vlgmr.msra.gmra.mrb[0].mxu1 %vm421_vm1, %v411_v5  ;;  %s409_s13 = scalar_lea.vmem %s1363_s2, %s849_s29  ;;  %s401_s29 = scalar_lea.vmem [#allocation4], %s1354_s25 }
  0x21   : > { %916 = vmatprep.mubr.msk.bf16.mxu1 %vm1076_vm0, %v1075_v1  ;;  %v414_v11 = vld [vmem:[%s409_s13] sm:$0xff]  ;;  %913 = vmatpush3.bf16.msra.mxu1 %v975_v31  ;;  %s1269_s13 = scalar_lea.hbm %s1353_s11, %s1355_s22  ;;  %s739_s14 = sshll.u32 %s401_s29, 4  ;;  %s740_s14 = int_to_ptr.vmem [resolvable:$true] %s739_s14 }
  0x22   : > { %889 = vmatmul.mubr.msk.bf16.vlgmr.msra.gmra.mrb[0].mxu0 %vm421_vm1, %v411_v5  ;;  %470 = vperm.xlu0 %967, %v414_v11   ;;  %s979_s16 = scalar_lea.vmem %s740_s14, 128  ;;  %s1078_s25 = smov [#allocation4]  }
  0x23   : > { %901 = vmatpush3.bf16.msra.mxu0 %v971_v6  ;;  %908 = vmatprep.mubr.msk.bf16.mxu0 %vm1076_vm0, %v1075_v1  ;;  %p980_p11 = scmp.ne.s32.totalorder %s740_s14, %s979_s16  ;;  %s983_s0 = sshll.u32 %s1078_s25, 4  ;;  %s984_s0 = int_to_ptr.vmem [resolvable:$false] %s983_s0 }
  0x24   : > { %902 = vmatprep.subr.bf16.mxu0 %v1075_v1  ;;  %914 = vmatprep.subr.bf16.mxu1 %v1075_v1  ;;  %s985_s1 = scalar_lea.vmem %s984_s0, 256  ;;  %p986_p0 = scmp.lt.s32.totalorder %s740_s14, %s984_s0 }
  0x25   : > { %915 = vmatpush3.bf16.msra.mxu1 %v976_v32  ;;  %p981_p12 = pnand %p980_p11, %p1178_p5  ;;  %p987_p1 = scmp.lt.s32.totalorder %s985_s1, %s979_s16 }
  0x27   : > { %903 = vmatpush3.bf16.msra.mxu0 %v972_v7  ;;  %p982_p13 = pneg %p981_p12  ;;  %p988_p2 = por %p987_p1, %p986_p0 }
  0x28   : > { %904 = vmatprep.subr.bf16.mxu0 %v1075_v1 }
  0x29   : > { %p989_p3 = pnand %p988_p2, %p982_p13 }
  0x2b   : > { %905 = vmatpush3.bf16.msra.mxu0 %v973_v8 }
  0x2c   : > { %906 = vmatprep.subr.bf16.mxu0 %v1075_v1 }
  0x2f   : > { %907 = vmatpush3.bf16.msra.mxu0 %v974_v9 }
  0xa1   : > { %v471_v26 = vpop.permute.xlu0 %470 }
  0xa2   : > { %v479_v28 = vadd.f32 %v852_v25, %v471_v26 }
  0xf3   : > { %v542_v13 = vpop.f32.mrb[0].mxu1 }
  0xf4   : > { %v543_v14 = vadd.f32 %v853_v12, %v542_v13  ;;  %v898_v15 = vpop.f32.mrb[1].mxu1 }
  0xf5   : > { %v545_v16 = vpop.f32.mrb[2].mxu1  ;;  %v462_v19 = vpop.f32.mrb[0].mxu0 }
  0xf6   : > { %vm548_vm2 = vcmp.ge.f32.partialorder %v543_v14, 0.0  ;;  %v549_v17 = vmul.f32 0.01, %v543_v14  ;;  %v899_v18 = vpop.f32.mrb[3].mxu1  ;;  %v890_v21 = vpop.f32.mrb[1].mxu0  ;;  %v480_v27 = vmul.f32 2.0, %v462_v19 }
  0xf7   : > { %v465_v23 = vpop.f32.mrb[2].mxu0 }
  0xf8   : > { %v550_v20 = vsel %vm548_vm2, %v543_v14, %v549_v17  ;;  %v891_v24 = vpop.f32.mrb[3].mxu0  ;;  %v481_v29 = vsub.f32 %v479_v28, %v480_v27 }
  0xf9   : > { %v560_v22 = vpack.c.bf16 %v550_v20, %v550_v20 }
  0xfa   : > { %v482_v30 = vmax.f32 %v481_v29, 0.0 }
  0xfb   : > { %909 = vmatmul.mubr.msk.bf16.vlgmr.msra.gmra.mrb[4].mxu0 %vm591_vm3, %v560_v22 }
  0xfc   : > { %484 = vst.msk [vmem:[%s401_s29] sm:$0xff] %vm483_vm4, %v482_v30 }
 0x1ce   : > { %v629_v34 = vpop.f32.mrb[4].mxu0 }
 0x1cf   : > { %v630_v35 = vadd.f32 %v857_v33, %v629_v34  ;;  %v910_v36 = vpop.f32.mrb[5].mxu0 }
 0x1d0   : > { %v632_v37 = vpop.f32.mrb[6].mxu0 }
 0x1d1   : > { %vm635_vm5 = vcmp.ge.f32.partialorder %v630_v35, 0.0  ;;  %v636_v38 = vmul.f32 0.01, %v630_v35  ;;  %v911_v39 = vpop.f32.mrb[7].mxu0 }
 0x1d3   : > { %v637_v40 = vsel %vm635_vm5, %v630_v35, %v636_v38 }
 0x1d4   : > { %v643_v41 = vpack.c.bf16 %v637_v40, %v637_v40 }
 0x1d6   : > { %917 = vmatmul.mubr.msk.bf16.vlgmr.msra.gmra.mrb[4].mxu1 %vm421_vm1, %v643_v41 }
 0x1d7   : > { %992 = shalt.err (!%p989_p3)
}
 0x1d8   : > { %s993_s29 = scalar_lea.hbm %s1269_s13, 128  ;;  %s997_s25 = scalar_lea.hbm %s1353_s11, 256 }
 0x1d9   : > { %p994_p4 = scmp.ne.s32.totalorder %s1269_s13, %s993_s29  ;;  %p998_p9 = scmp.lt.u32.totalorder %s1269_s13, %s1353_s11 }
 0x1da   : > { %p999_p10 = scmp.lt.u32.totalorder %s997_s25, %s993_s29  ;;  %p1001_p12 = scmp.lt.u32.totalorder %s993_s29, %s1269_s13 }
 0x1db   : > { %p995_p7 = pnand %p994_p4, %p1178_p5 }
 0x1dc   : > { %p1000_p11 = por %p999_p10, %p998_p9 }
 0x1dd   : > { %p996_p8 = pneg %p995_p7 }
 0x1de   : > { %p1002_p13 = por %p1001_p12, %p1000_p11 }
 0x1e0   : > { %p1003_p0 = pnand %p1002_p13, %p996_p8 }
 0x1e2   : > { %1006 = shalt.err (!%p1003_p0)
}
 0x1e3   : > { %921 = dma.vmem_to_hbm [thread:$0]  (%p1178_p5), %s740_s14, 128, %s1269_s13, %s713_s15   ;;  %v863_v42 = vld [vmem:[%s1351_s9] ss:$0 sm:$0xff] }
 0x1e4   : > { %s1364_s22 = sshll.u32 %s1247_s24, 3  ;;  %s1365_s12 = sshll.u32 %s1161_s21, 7 }
 0x1e5   : > { %s394_s29 = scalar_lea.vmem [#allocation2], %s1364_s22  ;;  %s1299_s2 = scalar_lea.hbm %s1352_s10, %s1365_s12 }
 0x1e6   : > { %s726_s30 = sshll.u32 %s394_s29, 4  ;;  %s708_s13 = scalar_lea.sflag [#allocation3], %s1247_s24  ;;  %s1301_s30 = int_to_ptr.vmem [resolvable:$true] %s726_s30 }
 0x1e7   : > { %s1007_s14 = scalar_lea.vmem %s1301_s30, 128  ;;  %s1079_s15 = smov [#allocation2]  }
 0x1e8   : > { %p1008_p1 = scmp.ne.s32.totalorder %s1301_s30, %s1007_s14  ;;  %s1011_s21 = sshll.u32 %s1079_s15, 4  ;;  %s1012_s21 = int_to_ptr.vmem [resolvable:$false] %s1011_s21 }
 0x1e9   : > { %s1013_s1 = scalar_lea.vmem %s1012_s21, 256  ;;  %p1014_p4 = scmp.lt.s32.totalorder %s1301_s30, %s1012_s21 }
 0x1ea   : > { %p1009_p2 = pnand %p1008_p1, %p1178_p5  ;;  %p1015_p7 = scmp.lt.s32.totalorder %s1013_s1, %s1007_s14 }
 0x1ec   : > { %p1010_p3 = pneg %p1009_p2  ;;  %p1016_p8 = por %p1015_p7, %p1014_p4 }
 0x1ee   : > { %p1017_p9 = pnand %p1016_p8, %p1010_p3 }
 0x2a9   : > { %v699_v43 = vpop.f32.mrb[4].mxu1 }
 0x2aa   : > { %v700_v44 = vadd.f32 %v863_v42, %v699_v43  ;;  %v918_v45 = vpop.f32.mrb[5].mxu1 }
 0x2ab   : > { %v702_v46 = vpop.f32.mrb[6].mxu1 }
 0x2ac   : > { %977 = vtanh.f32 %v700_v44  ;;  %v919_v47 = vpop.f32.mrb[7].mxu1 }
 0x2b6   : > { %v978_v48 = vpop.eup %977 }
 0x2b7   : > { %706 = vst [vmem:[%s394_s29] sm:$0xff] %v978_v48 }
 0x2b8   : > { %1020 = shalt.err (!%p1017_p9)
}
 0x2b9   : > { %s1021_s24 = scalar_lea.hbm %s1299_s2, 128  ;;  %s1025_s29 = scalar_lea.hbm %s1352_s10, 256 }
 0x2ba   : > { %p1022_p10 = scmp.ne.s32.totalorder %s1299_s2, %s1021_s24  ;;  %p1026_p13 = scmp.lt.u32.totalorder %s1299_s2, %s1352_s10 }
 0x2bb   : > { %p1027_p0 = scmp.lt.u32.totalorder %s1025_s29, %s1021_s24  ;;  %p1029_p2 = scmp.lt.u32.totalorder %s1021_s24, %s1299_s2 }
 0x2bc   : > { %p1023_p11 = pnand %p1022_p10, %p1178_p5 }
 0x2bd   : > { %p1028_p1 = por %p1027_p0, %p1026_p13 }
 0x2be   : > { %p1024_p12 = pneg %p1023_p11 }
 0x2bf   : > { %p1030_p3 = por %p1029_p2, %p1028_p1 }
 0x2c1   : > { %p1031_p4 = pnand %p1030_p3, %p1024_p12 }
 0x2c3   : > { %1034 = shalt.err (!%p1031_p4)
}
 0x2c4   : > { %920 = dma.vmem_to_hbm [thread:$0]  (%p1178_p5), %s1301_s30, 128, %s1299_s2, %s708_s13  }
 0x2c5 PF: > { %p931_p7 = scmp.ge.s32.totalorder %s1073_s20, 2  ;;  %s751_s0 = sand.u32 1, %s1061_s17  }
 0x2c6   : > { %s752_s14 = scalar_lea.sflag [#allocation3], %s751_s0 }
 0x2c7   : > { %p925_p8 = pnand %p931_p7, %p1182_p6 }
 0x2c9   : > { %1052 = dma.done.wait (!%p925_p8), %s752_s14, 128  }
 0x2ca   : > { %1054 = vsyncadd (!%p925_p8), %s752_s14, 4294967168  ;;  %s761_s15 = scalar_lea.sflag [#allocation5], %s751_s0 }
 0x2cb   : > { %1056 = dma.done.wait (!%p925_p8), %s761_s15, 128  }
 0x2cc   : > { %1058 = vsyncadd (!%p925_p8), %s761_s15, 4294967168  ;;  %p25_p5 = scmp.ge.s32.totalorder %s1165_s23, 4   ;;  %s1366_s17 = smov %s1065_s18 }
 0x2cd   : > { %s1367_s18 = smov %s1069_s19  ;;  %s1368_s19 = smov %s1176_s26 }
 0x2ce   : > { %s1369_s20 = smov %s1165_s23  ;;  %27 = sbr.rel (!%p25_p5) target bundleno = 9 (0x9), region = 115 }
 0x2d5   :  { %766 = vsyncpa [#allocation3], 1 }
 0x2d6   :  { %768 = vsyncpa [#allocation3 + $0x1], 1 }
 0x2d7   :  { %769 = vsyncpa [#allocation5], 1 }
 0x2d8   :  { %771 = vsyncpa [#allocation5 + $0x1], 1 }

</bundles_post_ra>
